<compile_context>
chip_gen: v7x
topology: tpu7x:2x2x1
jax: 0.10.0
libtpu: 0.0.40
codegen_flags: <defaults>
</compile_context>

<pallas_src>
import jax
import jax.numpy as jnp
from jax.experimental import pallas as pl
from jax.experimental.pallas import tpu as pltpu


def _round_up(n, m):
    return ((n + m - 1) // m) * m


_VMEM_BUDGET = 20 * 1024 * 1024   # target live-VMEM per grid step (estimate)
_VMEM_LIMIT = 32 * 1024 * 1024    # scoped VMEM limit handed to Mosaic (safe on all gens)


def _vmem_estimate(G, TB, obs_p, h1_p, h2_p, act_p, out_bytes):
    """Rough per-grid-step VMEM footprint (double-buffered blocks + temporaries)."""
    w = 2 * 2 * G * (obs_p * h1_p + h1_p * h2_p + h2_p * act_p)   # bf16 weights, 2 buffers
    b = 2 * 4 * G * (h1_p + h2_p + act_p)                         # f32 biases, 2 buffers
    xb = 2 * 2 * G * TB * obs_p                                   # bf16 activations, 2 buffers
    ob = 2 * out_bytes * G * TB * act_p                           # output, 2 buffers
    tmp = G * TB * (h1_p + h2_p) * (4 + 2)                        # f32 h1/h2 + bf16 operand copies
    return w + b + xb + ob + tmp


def _choose_tiles(P, B, obs_p, h1_p, h2_p, act_p, batch_tile, group_size, out_bytes):
    # Batch tile: as large as allowed (amortizes per-step overhead), VMEM-capped.
    TB = min(_round_up(B, 8), _round_up(max(batch_tile, 8), 8))
    while TB > 8 and _vmem_estimate(1, TB, obs_p, h1_p, h2_p, act_p, out_bytes) > _VMEM_BUDGET:
        TB = max(8, _round_up(TB // 2, 8))
    # Population group: largest divisor of P (<= group_size) that still fits VMEM.
    G = 1
    for g in range(min(group_size, P), 0, -1):
        if P % g == 0 and _vmem_estimate(g, TB, obs_p, h1_p, h2_p, act_p, out_bytes) <= _VMEM_BUDGET:
            G = g
            break
    return G, TB


def actor_kernel(x_ref, w1_ref, b1_ref, w2_ref, b2_ref, w3_ref, b3_ref, out_ref):
    # x_ref: (G, TB, obs_p) bf16; w*_ref: (G, in_p, out_p) bf16; b*_ref: (G, 1, out_p) f32
    x = x_ref[...]

    # fc1 -> ReLU (MXU in bf16, f32 accumulation, f32 elementwise)
    h1 = jnp.einsum("gbi,gio->gbo", x, w1_ref[...],
                    preferred_element_type=jnp.float32) + b1_ref[...]
    h1 = jnp.maximum(h1, 0.0)

    # fc2 -> ReLU
    h2 = jnp.einsum("gbi,gio->gbo", h1.astype(w2_ref.dtype), w2_ref[...],
                    preferred_element_type=jnp.float32) + b2_ref[...]
    h2 = jnp.maximum(h2, 0.0)

    # mu -> tanh
    h3 = jnp.einsum("gbi,gio->gbo", h2.astype(w3_ref.dtype), w3_ref[...],
                    preferred_element_type=jnp.float32) + b3_ref[...]
    out_ref[...] = jnp.tanh(h3).astype(out_ref.dtype)


def prepare_population_params(params, weight_dtype=jnp.bfloat16):
    """Pad feature dims to 128-lane multiples and cast weights for the MXU.

    Call ONCE per CEM generation (i.e. whenever the population weights change),
    not per forward call — this hoists the pad/cast pass off the critical path.
    """
    P, obs_dim, h1_dim = params["w1"].shape
    h2_dim = params["w2"].shape[-1]
    act_dim = params["w3"].shape[-1]
    obs_p, h1_p, h2_p, act_p = (_round_up(d, 128)
                                for d in (obs_dim, h1_dim, h2_dim, act_dim))

    def pad_to(a, shape):
        return jnp.pad(a, [(0, t - s) for s, t in zip(a.shape, shape)])

    return dict(
        w1=pad_to(params["w1"], (P, obs_p, h1_p)).astype(weight_dtype),
        w2=pad_to(params["w2"], (P, h1_p, h2_p)).astype(weight_dtype),
        w3=pad_to(params["w3"], (P, h2_p, act_p)).astype(weight_dtype),
        b1=pad_to(params["b1"], (P, h1_p)).astype(jnp.float32)[:, None, :],
        b2=pad_to(params["b2"], (P, h2_p)).astype(jnp.float32)[:, None, :],
        b3=pad_to(params["b3"], (P, act_p)).astype(jnp.float32)[:, None, :],
        dims=dict(obs=obs_dim, h1=h1_dim, h2=h2_dim, act=act_dim,
                  obs_p=obs_p, h1_p=h1_p, h2_p=h2_p, act_p=act_p),
    )


def actor_population_forward(x, prepared, *, batch_tile=2048, group_size=8,
                             out_dtype=jnp.bfloat16):
    """x: (P, B, input_dims) float32. prepared: output of prepare_population_params.
    Returns (P, B, n_actions) in out_dtype."""
    P, B, obs_dim = x.shape
    d = prepared["dims"]
    assert obs_dim == d["obs"], "state dim does not match prepared params"
    obs_p, h1_p, h2_p, act_p = d["obs_p"], d["h1_p"], d["h2_p"], d["act_p"]
    out_bytes = jnp.dtype(out_dtype).itemsize

    G, TB = _choose_tiles(P, B, obs_p, h1_p, h2_p, act_p,
                          batch_tile, group_size, out_bytes)
    B_p = _round_up(B, TB)
    n_pg, n_bt = P // G, B_p // TB

    # Only the activations are padded/cast per call (weights already prepared).
    x_p = jnp.pad(x, ((0, 0), (0, B_p - B), (0, obs_p - obs_dim))).astype(jnp.bfloat16)

    # Weights/biases: block index constant along the batch axis -> VMEM-resident
    # across all batch tiles of a population group.
    def w_spec(d_in, d_out):
        return pl.BlockSpec((G, d_in, d_out), lambda pg, i: (pg, 0, 0))

    def b_spec(d_out):
        return pl.BlockSpec((G, 1, d_out), lambda pg, i: (pg, 0, 0))

    flops = 2 * P * B_p * (obs_p * h1_p + h1_p * h2_p + h2_p * act_p)
    bytes_accessed = (
        x_p.size * 2
        + (prepared["w1"].size + prepared["w2"].size + prepared["w3"].size) * 2
        + (prepared["b1"].size + prepared["b2"].size + prepared["b3"].size) * 4
        + P * B_p * act_p * out_bytes
    )
    cost = pl.CostEstimate(
        flops=flops,
        transcendentals=P * B_p * act_p,   # tanh
        bytes_accessed=bytes_accessed,
    )

    # Megacore (v7x): shard the population-group axis across cores so each core
    # keeps its own members' weights; fall back to sharding the batch axis when
    # there is only one population group. No-op on v5e/v6e (single TC).
    dim_sem = ("parallel", "arbitrary") if n_pg > 1 else ("arbitrary", "parallel")

    out = pl.pallas_call(
        actor_kernel,
        out_shape=jax.ShapeDtypeStruct((P, B_p, act_p), out_dtype),
        grid=(n_pg, n_bt),
        in_specs=[
            pl.BlockSpec((G, TB, obs_p), lambda pg, i: (pg, i, 0)),  # activations
            w_spec(obs_p, h1_p), b_spec(h1_p),
            w_spec(h1_p, h2_p), b_spec(h2_p),
            w_spec(h2_p, act_p), b_spec(act_p),
        ],
        out_specs=pl.BlockSpec((G, TB, act_p), lambda pg, i: (pg, i, 0)),
        compiler_params=pltpu.CompilerParams(
            dimension_semantics=dim_sem,
            vmem_limit_bytes=_VMEM_LIMIT,
        ),
        cost_estimate=cost,
    )(x_p, prepared["w1"], prepared["b1"], prepared["w2"], prepared["b2"],
      prepared["w3"], prepared["b3"])

    return out[:, :B, :d["act"]]


def init_population_params(key, pop, input_dims, fc1_dims, fc2_dims, n_actions):
    """PyTorch nn.Linear default init, stacked over a CEM population axis.
    Weights stored as (pop, in, out) so the kernel computes x @ W + b."""
    keys = jax.random.split(key, 6)

    def linear(kw, kb, fan_in, fan_out):
        bound = 1.0 / (fan_in ** 0.5)
        w = jax.random.uniform(kw, (pop, fan_in, fan_out), jnp.float32, -bound, bound)
        b = jax.random.uniform(kb, (pop, fan_out), jnp.float32, -bound, bound)
        return w, b

    w1, b1 = linear(keys[0], keys[1], input_dims, fc1_dims)
    w2, b2 = linear(keys[2], keys[3], fc1_dims, fc2_dims)
    w3, b3 = linear(keys[4], keys[5], fc2_dims, n_actions)
    return dict(w1=w1, b1=b1, w2=w2, b2=b2, w3=w3, b3=b3)


def reference_forward(x, p):
    """Pure-JAX reference with matched numerics (bf16 matmul operands,
    f32 accumulation, f32 elementwise).  Note: bf16 operands deviate from the
    original f32 PyTorch ActorNetwork by ~1e-2 relative — acceptable for RL."""
    def mm(a, w):
        return jnp.einsum(
            "pbi,pio->pbo",
            a.astype(jnp.bfloat16), w.astype(jnp.bfloat16),
            preferred_element_type=jnp.float32)

    h1 = jnp.maximum(mm(x, p["w1"]) + p["b1"][:, None, :], 0.0)
    h2 = jnp.maximum(mm(h1, p["w2"]) + p["b2"][:, None, :], 0.0)
    return jnp.tanh(mm(h2, p["w3"]) + p["b3"][:, None, :])


if __name__ == "__main__":
    # Small shapes consistent with the module (real config is 400x300).
    pop = 2          # CEM population members fused into one pallas_call
    batch = 8
    input_dims = 16  # observation dimension
    fc1_dims = 32
    fc2_dims = 32
    n_actions = 4

    key = jax.random.PRNGKey(0)
    k_x, k_p = jax.random.split(key)
    x = jax.random.normal(k_x, (pop, batch, input_dims), dtype=jnp.float32)
    params = init_population_params(k_p, pop, input_dims, fc1_dims, fc2_dims, n_actions)

    # Pad + cast weights ONCE (per CEM generation), then run the fused forward.
    prepared = prepare_population_params(params)
    out = actor_population_forward(x, prepared)
    out = jax.block_until_ready(out)

    ref = reference_forward(x, params)
    assert out.shape == (pop, batch, n_actions)
    assert jnp.allclose(out.astype(jnp.float32), ref, atol=2e-2, rtol=2e-2), \
        "mismatch vs JAX reference"

    print("KERNEL_OK")
</pallas_src>

<mosaic_0001>
module attributes {stable_mosaic.version = 11 : i64} {
  func.func @actor_kernel(%arg0: i32, %arg1: i32, %arg2: memref<2x8x128xbf16, #tpu.memory_space<vmem>>, %arg3: memref<2x128x128xbf16, #tpu.memory_space<vmem>>, %arg4: memref<2x1x128xf32, #tpu.memory_space<vmem>>, %arg5: memref<2x128x128xbf16, #tpu.memory_space<vmem>>, %arg6: memref<2x1x128xf32, #tpu.memory_space<vmem>>, %arg7: memref<2x128x128xbf16, #tpu.memory_space<vmem>>, %arg8: memref<2x1x128xf32, #tpu.memory_space<vmem>>, %arg9: memref<2x8x128xbf16, #tpu.memory_space<vmem>>) attributes {dimension_semantics = [#tpu.dimension_semantics<arbitrary>, #tpu.dimension_semantics<parallel>], iteration_bounds = array<i64: 1, 1>, scalar_prefetch = 0 : i64, scratch_operands = 0 : i64, tpu.core_type = #tpu.core_type<tc>, window_params = [{transform_indices = @transform_0, window_bounds = array<i64: 2, 8, 128>}, {transform_indices = @transform_1, window_bounds = array<i64: 2, 128, 128>}, {transform_indices = @transform_2, window_bounds = array<i64: 2, 1, 128>}, {transform_indices = @transform_3, window_bounds = array<i64: 2, 128, 128>}, {transform_indices = @transform_4, window_bounds = array<i64: 2, 1, 128>}, {transform_indices = @transform_5, window_bounds = array<i64: 2, 128, 128>}, {transform_indices = @transform_6, window_bounds = array<i64: 2, 1, 128>}, {transform_indices = @transform_7, window_bounds = array<i64: 2, 8, 128>}]} {
    %c0 = arith.constant 0 : index
    %c0_0 = arith.constant 0 : index
    %c0_1 = arith.constant 0 : index
    %0 = vector.load %arg2[%c0, %c0_0, %c0_1] : memref<2x8x128xbf16, #tpu.memory_space<vmem>>, vector<2x8x128xbf16>
    %c0_2 = arith.constant 0 : index
    %c0_3 = arith.constant 0 : index
    %c0_4 = arith.constant 0 : index
    %1 = vector.load %arg3[%c0_2, %c0_3, %c0_4] : memref<2x128x128xbf16, #tpu.memory_space<vmem>>, vector<2x128x128xbf16>
    "tpu.trace_start"() <{level = 10 : i32, message = "gbi,gio->gbo"}> : () -> ()
    %cst = arith.constant dense<0.000000e+00> : vector<2x8x128xf32>
    %2 = tpu.matmul %0, %1, %cst {dimension_numbers = #tpu.dot_dimension_numbers<[2], [1], [1], [2], [0, 0, 0, 1, 1, 2], [0], [0]>} : vector<2x8x128xbf16>, vector<2x128x128xbf16>, vector<2x8x128xf32> -> vector<2x8x128xf32>
    "tpu.trace_stop"() : () -> ()
    %c0_5 = arith.constant 0 : index
    %c0_6 = arith.constant 0 : index
    %c0_7 = arith.constant 0 : index
    %3 = vector.load %arg4[%c0_5, %c0_6, %c0_7] : memref<2x1x128xf32, #tpu.memory_space<vmem>>, vector<2x1x128xf32>
    %4 = vector.broadcast %3 : vector<2x1x128xf32> to vector<2x8x128xf32>
    %5 = arith.addf %2, %4 : vector<2x8x128xf32>
    %cst_8 = arith.constant 0.000000e+00 : f32
    %6 = vector.broadcast %cst_8 : f32 to vector<2x8x128xf32>
    %7 = arith.maximumf %5, %6 : vector<2x8x128xf32>
    %8 = arith.truncf %7 : vector<2x8x128xf32> to vector<2x8x128xbf16>
    %c0_9 = arith.constant 0 : index
    %c0_10 = arith.constant 0 : index
    %c0_11 = arith.constant 0 : index
    %9 = vector.load %arg5[%c0_9, %c0_10, %c0_11] : memref<2x128x128xbf16, #tpu.memory_space<vmem>>, vector<2x128x128xbf16>
    "tpu.trace_start"() <{level = 10 : i32, message = "gbi,gio->gbo"}> : () -> ()
    %cst_12 = arith.constant dense<0.000000e+00> : vector<2x8x128xf32>
    %10 = tpu.matmul %8, %9, %cst_12 {dimension_numbers = #tpu.dot_dimension_numbers<[2], [1], [1], [2], [0, 0, 0, 1, 1, 2], [0], [0]>} : vector<2x8x128xbf16>, vector<2x128x128xbf16>, vector<2x8x128xf32> -> vector<2x8x128xf32>
    "tpu.trace_stop"() : () -> ()
    %c0_13 = arith.constant 0 : index
    %c0_14 = arith.constant 0 : index
    %c0_15 = arith.constant 0 : index
    %11 = vector.load %arg6[%c0_13, %c0_14, %c0_15] : memref<2x1x128xf32, #tpu.memory_space<vmem>>, vector<2x1x128xf32>
    %12 = vector.broadcast %11 : vector<2x1x128xf32> to vector<2x8x128xf32>
    %13 = arith.addf %10, %12 : vector<2x8x128xf32>
    %cst_16 = arith.constant 0.000000e+00 : f32
    %14 = vector.broadcast %cst_16 : f32 to vector<2x8x128xf32>
    %15 = arith.maximumf %13, %14 : vector<2x8x128xf32>
    %16 = arith.truncf %15 : vector<2x8x128xf32> to vector<2x8x128xbf16>
    %c0_17 = arith.constant 0 : index
    %c0_18 = arith.constant 0 : index
    %c0_19 = arith.constant 0 : index
    %17 = vector.load %arg7[%c0_17, %c0_18, %c0_19] : memref<2x128x128xbf16, #tpu.memory_space<vmem>>, vector<2x128x128xbf16>
    "tpu.trace_start"() <{level = 10 : i32, message = "gbi,gio->gbo"}> : () -> ()
    %cst_20 = arith.constant dense<0.000000e+00> : vector<2x8x128xf32>
    %18 = tpu.matmul %16, %17, %cst_20 {dimension_numbers = #tpu.dot_dimension_numbers<[2], [1], [1], [2], [0, 0, 0, 1, 1, 2], [0], [0]>} : vector<2x8x128xbf16>, vector<2x128x128xbf16>, vector<2x8x128xf32> -> vector<2x8x128xf32>
    "tpu.trace_stop"() : () -> ()
    %c0_21 = arith.constant 0 : index
    %c0_22 = arith.constant 0 : index
    %c0_23 = arith.constant 0 : index
    %19 = vector.load %arg8[%c0_21, %c0_22, %c0_23] : memref<2x1x128xf32, #tpu.memory_space<vmem>>, vector<2x1x128xf32>
    %20 = vector.broadcast %19 : vector<2x1x128xf32> to vector<2x8x128xf32>
    %21 = arith.addf %18, %20 : vector<2x8x128xf32>
    %22 = math.tanh %21 : vector<2x8x128xf32>
    %23 = arith.truncf %22 : vector<2x8x128xf32> to vector<2x8x128xbf16>
    %c0_24 = arith.constant 0 : index
    %c0_25 = arith.constant 0 : index
    %c0_26 = arith.constant 0 : index
    %24 = vector.load %arg9[%c0_24, %c0_25, %c0_26] : memref<2x8x128xbf16, #tpu.memory_space<vmem>>, vector<2x8x128xbf16>
    tpu.vector_store %arg9[%c0_24, %c0_25, %c0_26], %23 {strides = array<i32>} : memref<2x8x128xbf16, #tpu.memory_space<vmem>>, vector<2x8x128xbf16>,
    return
  }
  func.func @transform_0(%arg0: i32, %arg1: i32) -> (i32, i32, i32) {
    %c0_i32 = arith.constant 0 : i32
    %c0_i32_0 = arith.constant 0 : i32
    return %arg0, %arg1, %c0_i32 : i32, i32, i32
  }
  func.func @transform_1(%arg0: i32, %arg1: i32) -> (i32, i32, i32) {
    %c0_i32 = arith.constant 0 : i32
    %c0_i32_0 = arith.constant 0 : i32
    %c0_i32_1 = arith.constant 0 : i32
    return %arg0, %c0_i32, %c0_i32_0 : i32, i32, i32
  }
  func.func @transform_2(%arg0: i32, %arg1: i32) -> (i32, i32, i32) {
    %c0_i32 = arith.constant 0 : i32
    %c0_i32_0 = arith.constant 0 : i32
    %c0_i32_1 = arith.constant 0 : i32
    return %arg0, %c0_i32, %c0_i32_0 : i32, i32, i32
  }
  func.func @transform_3(%arg0: i32, %arg1: i32) -> (i32, i32, i32) {
    %c0_i32 = arith.constant 0 : i32
    %c0_i32_0 = arith.constant 0 : i32
    %c0_i32_1 = arith.constant 0 : i32
    return %arg0, %c0_i32, %c0_i32_0 : i32, i32, i32
  }
  func.func @transform_4(%arg0: i32, %arg1: i32) -> (i32, i32, i32) {
    %c0_i32 = arith.constant 0 : i32
    %c0_i32_0 = arith.constant 0 : i32
    %c0_i32_1 = arith.constant 0 : i32
    return %arg0, %c0_i32, %c0_i32_0 : i32, i32, i32
  }
  func.func @transform_5(%arg0: i32, %arg1: i32) -> (i32, i32, i32) {
    %c0_i32 = arith.constant 0 : i32
    %c0_i32_0 = arith.constant 0 : i32
    %c0_i32_1 = arith.constant 0 : i32
    return %arg0, %c0_i32, %c0_i32_0 : i32, i32, i32
  }
  func.func @transform_6(%arg0: i32, %arg1: i32) -> (i32, i32, i32) {
    %c0_i32 = arith.constant 0 : i32
    %c0_i32_0 = arith.constant 0 : i32
    %c0_i32_1 = arith.constant 0 : i32
    return %arg0, %c0_i32, %c0_i32_0 : i32, i32, i32
  }
  func.func @transform_7(%arg0: i32, %arg1: i32) -> (i32, i32, i32) {
    %c0_i32 = arith.constant 0 : i32
    %c0_i32_0 = arith.constant 0 : i32
    return %arg0, %arg1, %c0_i32 : i32, i32, i32
  }
}

</mosaic_0001>

<bundles_post_ra>
// kernel: tpu_custom_call.1
= control target key start
LH: loop header
LB: loop body
LE: loop exit
PB: predicated region body
PF: predicated region fallthrough
CT: control target
= control target key end

     0   :  { %12 = vsyncpa [#allocation3], 0  ;;  %s1412_s0 = inlined_call_operand.hbm [shape: bf16[2,8,128], index: 0, kind: input, shape index: {}]   ;;  %s1413_s1 = inlined_call_operand.hbm [shape: bf16[2,128,128], index: 1, kind: input, shape index: {}]   ;;  %s1414_s2 = inlined_call_operand.vmem [shape: f32[2,1,128], index: 2, kind: input, shape index: {}]   ;;  %s1415_s3 = inlined_call_operand.hbm [shape: bf16[2,128,128], index: 3, kind: input, shape index: {}]   ;;  %s1416_s4 = inlined_call_operand.vmem [shape: f32[2,1,128], index: 4, kind: input, shape index: {}]   ;;  %s1417_s5 = inlined_call_operand.hbm [shape: bf16[2,128,128], index: 5, kind: input, shape index: {}]   ;;  %s1418_s6 = inlined_call_operand.vmem [shape: f32[2,1,128], index: 6, kind: input, shape index: {}]   ;;  %s1419_s7 = inlined_call_operand.hbm [shape: bf16[2,8,128], index: 7, kind: output, shape index: {}]  }
   0x1   :  { %13 = vsyncpa [#allocation6], 0 }
   0x2   :  { %14 = vsyncpa [#allocation9], 0 }
   0x3   :  { %15 = vsyncpa [#allocation4], 0  ;;  %s1196_s24 = smov [#allocation5]   ;;  %s1197_s26 = smov [#allocation2]  }
   0x4   :  { %s33_s25 = sshll.u32 %s1196_s24, 4  ;;  %s21_s27 = sshll.u32 %s1197_s26, 4  ;;  %s34_s25 = int_to_ptr.vmem [resolvable:$true] %s33_s25  ;;  %s1245_s27 = int_to_ptr.vmem [resolvable:$true] %s21_s27 }
   0x5   :  { %s1078_s30 = scalar_lea.hbm %s1413_s1, 2048 }
   0x6   :  { %p1079_p0 = scmp.ne.s32.totalorder %s1413_s1, %s1078_s30  ;;  %p1082_p1 = scmp.lt.u32.totalorder %s1078_s30, %s1413_s1 }
   0x8   :  { %p1084_p2 = pnand %p1082_p1, %p1079_p0 }
   0xa   :  { %1087 = shalt.err (!%p1084_p2)
}
   0xb   :  { %s1088_s12 = scalar_lea.vmem %s34_s25, 2048  ;;  %p1093_p4 = scmp.lt.s32.totalorder %s34_s25, %s34_s25 }
   0xc   :  { %p1089_p3 = scmp.ne.s32.totalorder %s34_s25, %s1088_s12  ;;  %p1094_p5 = scmp.lt.s32.totalorder %s1088_s12, %s1088_s12 }
   0xe   :  { %p1095_p6 = por %p1094_p5, %p1093_p4 }
  0x10   :  { %p1096_p7 = pnand %p1095_p6, %p1089_p3 }
  0x12   :  { %1099 = shalt.err (!%p1096_p7)
}
  0x13   :  { %s1198_s13 = smov 64   ;;  %s1199_s14 = smov 4  }
  0x14   :  { %39 = dma.hbm_to_vmem [thread:$0]  %s1413_s1, 2048, %s34_s25, [#allocation6], %s1198_s13, %s1198_s13, %s1199_s14  }
  0x15   :  { %s1100_s19 = scalar_lea.hbm %s1412_s0, 128 }
  0x16   :  { %p1101_p8 = scmp.ne.s32.totalorder %s1412_s0, %s1100_s19  ;;  %p1104_p9 = scmp.lt.u32.totalorder %s1100_s19, %s1412_s0 }
  0x18   :  { %p1106_p10 = pnand %p1104_p9, %p1101_p8 }
  0x1a   :  { %1109 = shalt.err (!%p1106_p10)
}
  0x1b   :  { %s1110_s24 = scalar_lea.vmem %s1245_s27, 128  ;;  %p1115_p12 = scmp.lt.s32.totalorder %s1245_s27, %s1245_s27 }
  0x1c   :  { %p1111_p11 = scmp.ne.s32.totalorder %s1245_s27, %s1110_s24  ;;  %p1116_p13 = scmp.lt.s32.totalorder %s1110_s24, %s1110_s24 }
  0x1e   :  { %p1117_p0 = por %p1116_p13, %p1115_p12 }
  0x20   :  { %p1118_p1 = pnand %p1117_p0, %p1111_p11 }
  0x22   :  { %1121 = shalt.err (!%p1118_p1)
}
  0x23   :  { %27 = dma.hbm_to_vmem [thread:$0]  %s1412_s0, 128, %s1245_s27, [#allocation3], %s1198_s13, %s1198_s13, %s1199_s14  }
  0x24   :  { %s1200_s26 = smov [#allocation7]   ;;  %s1201_s29 = smov [#allocation8]  }
  0x25   :  { %s47_s28 = sshll.u32 %s1200_s26, 4  ;;  %s61_s30 = sshll.u32 %s1201_s29, 4  ;;  %s48_s28 = int_to_ptr.vmem [resolvable:$true] %s47_s28  ;;  %s1282_s30 = int_to_ptr.vmem [resolvable:$true] %s61_s30 }
  0x26   :  { %s1122_s10 = scalar_lea.hbm %s1415_s3, 2048 }
  0x27   :  { %p1123_p2 = scmp.ne.s32.totalorder %s1415_s3, %s1122_s10  ;;  %p1126_p3 = scmp.lt.u32.totalorder %s1122_s10, %s1415_s3 }
  0x29   :  { %p1128_p4 = pnand %p1126_p3, %p1123_p2 }
  0x2b   :  { %1131 = shalt.err (!%p1128_p4)
}
  0x2c   :  { %s1132_s0 = scalar_lea.vmem %s48_s28, 2048  ;;  %p1137_p6 = scmp.lt.s32.totalorder %s48_s28, %s48_s28 }
  0x2d   :  { %p1133_p5 = scmp.ne.s32.totalorder %s48_s28, %s1132_s0  ;;  %p1138_p7 = scmp.lt.s32.totalorder %s1132_s0, %s1132_s0 }
  0x2f   :  { %p1139_p8 = por %p1138_p7, %p1137_p6 }
  0x31   :  { %p1140_p9 = pnand %p1139_p8, %p1133_p5 }
  0x33   :  { %1143 = shalt.err (!%p1140_p9)
}
  0x34   :  { %53 = dma.hbm_to_vmem [thread:$0]  %s1415_s3, 2048, %s48_s28, [#allocation6], %s1198_s13, %s1198_s13, %s1199_s14  }
  0x35   :  { %s1144_s20 = scalar_lea.hbm %s1417_s5, 2048 }
  0x36   :  { %p1145_p10 = scmp.ne.s32.totalorder %s1417_s5, %s1144_s20  ;;  %p1148_p11 = scmp.lt.u32.totalorder %s1144_s20, %s1417_s5 }
  0x38   :  { %p1150_p12 = pnand %p1148_p11, %p1145_p10 }
  0x3a   :  { %1153 = shalt.err (!%p1150_p12)
}
  0x3b   :  { %s1154_s1 = scalar_lea.vmem %s1282_s30, 2048  ;;  %p1159_p0 = scmp.lt.s32.totalorder %s1282_s30, %s1282_s30 }
  0x3c   :  { %p1155_p13 = scmp.ne.s32.totalorder %s1282_s30, %s1154_s1  ;;  %p1160_p1 = scmp.lt.s32.totalorder %s1154_s1, %s1154_s1 }
  0x3e   :  { %p1161_p2 = por %p1160_p1, %p1159_p0 }
  0x40   :  { %p1162_p3 = pnand %p1161_p2, %p1155_p13 }
  0x42   :  { %1165 = shalt.err (!%p1162_p3)
}
  0x43   :  { %67 = dma.hbm_to_vmem [thread:$0]  %s1417_s5, 2048, %s1282_s30, [#allocation9], %s1198_s13, %s1198_s13, %s1199_s14  }
  0x44   :  { %1188 = dma.done.wait [#allocation3], 128  }
  0x45   :  { %1189 = vsyncadd [#allocation3], 4294967168 }
  0x46   :  { %1190 = dma.done.wait [#allocation6], 4096  }
  0x47   :  { %1191 = vsyncadd [#allocation6], 4294963200 }
  0x48   :  { %1192 = dma.done.wait [#allocation9], 2048  }
  0x49   :  { %1193 = vsyncadd [#allocation9], 4294965248  ;;  %v1202_v0 = vmov 0.0   ;;  %vm1203_vm0 = vmmov 0   ;;  %v1026_v1 = vld [vmem:[#allocation5] sm:$0xff]   ;;  %v1028_v3 = vld [vmem:[#allocation5 + $0x8] sm:$0xff]  }
  0x4a   :  { %897 = vmatprep.subr.bf16.mxu0 %v1202_v0  ;;  %917 = vmatprep.subr.bf16.mxu1 %v1202_v0  ;;  %v1027_v2 = vld [vmem:[#allocation5 + $0x40] sm:$0xff]   ;;  %v1029_v4 = vld [vmem:[#allocation5 + $0x48] sm:$0xff]   ;;  %v1030_v5 = vld [vmem:[#allocation5 + $0x10] sm:$0xff]   ;;  %s1204_s15 = smov [#allocation10]  }
  0x4b   :  { %913 = vmatprep.mubr.msk.bf16.mxu0 %vm1203_vm0, %v1202_v0  ;;  %933 = vmatprep.mubr.msk.bf16.mxu1 %vm1203_vm0, %v1202_v0  ;;  %v1031_v6 = vld [vmem:[#allocation5 + $0x50] sm:$0xff]   ;;  %v1032_v7 = vld [vmem:[#allocation5 + $0x18] sm:$0xff]   ;;  %v1034_v9 = vld [vmem:[#allocation5 + $0x20] sm:$0xff]   ;;  %s770_s16 = sshll.u32 %s1204_s15, 4  ;;  %s771_s16 = int_to_ptr.vmem [resolvable:$true] %s770_s16 }
  0x4c   :  { %898 = vmatpush3.bf16.msra.mxu0 %v1026_v1  ;;  %918 = vmatpush3.bf16.msra.mxu1 %v1027_v2  ;;  %v1033_v8 = vld [vmem:[#allocation5 + $0x58] sm:$0xff]   ;;  %v1035_v10 = vld [vmem:[#allocation5 + $0x60] sm:$0xff]   ;;  %v1036_v11 = vld [vmem:[#allocation5 + $0x28] sm:$0xff]   ;;  %p1171_p5 = scmp.lt.s32.totalorder %s771_s16, %s771_s16 }
  0x4d   :  { %899 = vmatprep.subr.bf16.mxu0 %v1202_v0  ;;  %919 = vmatprep.subr.bf16.mxu1 %v1202_v0  ;;  %v1037_v12 = vld [vmem:[#allocation5 + $0x68] sm:$0xff]   ;;  %v1038_v13 = vld [vmem:[#allocation5 + $0x30] sm:$0xff]   ;;  %v1040_v15 = vld [vmem:[#allocation5 + $0x38] sm:$0xff]  }
  0x4e   :  { %v1039_v14 = vld [vmem:[#allocation5 + $0x70] sm:$0xff]   ;;  %v1041_v16 = vld [vmem:[#allocation5 + $0x78] sm:$0xff]   ;;  %v1042_v18 = vld [vmem:[#allocation7] sm:$0xff]  }
  0x4f   :  { %v83_v17 = vld [vmem:[#allocation2] sm:$0xf]  ;;  %v84_v19 = vld [vmem:[#allocation2 + $0x4] sm:$0xf]  ;;  %v1043_v20 = vld [vmem:[#allocation7 + $0x40] sm:$0xff]  }
  0x50   :  { %900 = vmatpush3.bf16.msra.mxu0 %v1028_v3  ;;  %920 = vmatpush3.bf16.msra.mxu1 %v1029_v4  ;;  %v1044_v21 = vld [vmem:[#allocation7 + $0x8] sm:$0xff]   ;;  %v1046_v23 = vld [vmem:[#allocation7 + $0x10] sm:$0xff]   ;;  %v1048_v25 = vld [vmem:[#allocation7 + $0x18] sm:$0xff]  }
  0x51   :  { %901 = vmatprep.subr.bf16.mxu0 %v1202_v0  ;;  %921 = vmatprep.subr.bf16.mxu1 %v1202_v0  ;;  %v1045_v22 = vld [vmem:[#allocation7 + $0x48] sm:$0xff]   ;;  %v1047_v24 = vld [vmem:[#allocation7 + $0x50] sm:$0xff]   ;;  %v1049_v26 = vld [vmem:[#allocation7 + $0x58] sm:$0xff]  }
  0x52   :  { %v1050_v27 = vld [vmem:[#allocation7 + $0x20] sm:$0xff]   ;;  %v1052_v29 = vld [vmem:[#allocation7 + $0x28] sm:$0xff]   ;;  %v1054_v31 = vld [vmem:[#allocation7 + $0x30] sm:$0xff]  }
  0x53   :  { %v1051_v28 = vld [vmem:[#allocation7 + $0x60] sm:$0xff]   ;;  %v1053_v30 = vld [vmem:[#allocation7 + $0x68] sm:$0xff]   ;;  %v1055_v32 = vld [vmem:[#allocation7 + $0x70] sm:$0xff]  }
  0x54   :  { %902 = vmatpush3.bf16.msra.mxu0 %v1030_v5  ;;  %922 = vmatpush3.bf16.msra.mxu1 %v1031_v6  ;;  %v1056_v33 = vld [vmem:[#allocation7 + $0x38] sm:$0xff]   ;;  %v1058_v49 = vld [vmem:[#allocation8] sm:$0xff]   ;;  %v1060_v53 = vld [vmem:[#allocation8 + $0x8] sm:$0xff]  }
  0x55   :  { %903 = vmatprep.subr.bf16.mxu0 %v1202_v0  ;;  %923 = vmatprep.subr.bf16.mxu1 %v1202_v0  ;;  %v1057_v34 = vld [vmem:[#allocation7 + $0x78] sm:$0xff]   ;;  %v1059_v51 = vld [vmem:[#allocation8 + $0x40] sm:$0xff]   ;;  %v1061_v54 = vld [vmem:[#allocation8 + $0x48] sm:$0xff]  }
  0x56   :  { %v784_v35 = vld [vmem:[%s1414_s2] ss:$0 sm:$0xff]  ;;  %v785_v36 = vld [vmem:[%s1414_s2 + $0x1] ss:$0 sm:$0xff]  ;;  %v1062_v55 = vld [vmem:[#allocation8 + $0x10] sm:$0xff]  }
  0x57   :  { %v1063_v56 = vld [vmem:[#allocation8 + $0x50] sm:$0xff]   ;;  %v1064_v57 = vld [vmem:[#allocation8 + $0x18] sm:$0xff]   ;;  %v1066_v59 = vld [vmem:[#allocation8 + $0x20] sm:$0xff]  }
  0x58   :  { %904 = vmatpush3.bf16.msra.mxu0 %v1032_v7  ;;  %924 = vmatpush3.bf16.msra.mxu1 %v1033_v8  ;;  %v1065_v58 = vld [vmem:[#allocation8 + $0x58] sm:$0xff]   ;;  %v1067_v60 = vld [vmem:[#allocation8 + $0x60] sm:$0xff]   ;;  %v1068_v61 = vld [vmem:[#allocation8 + $0x28] sm:$0xff]  }
  0x59   :  { %905 = vmatprep.subr.bf16.mxu0 %v1202_v0  ;;  %925 = vmatprep.subr.bf16.mxu1 %v1202_v0  ;;  %v1069_v62 = vld [vmem:[#allocation8 + $0x68] sm:$0xff]   ;;  %v1070_v63 = vld [vmem:[#allocation8 + $0x30] sm:$0xff]   ;;  %v1072_v2 = vld [vmem:[#allocation8 + $0x38] sm:$0xff]  }
  0x5a   :  { %v1071_v1 = vld [vmem:[#allocation8 + $0x70] sm:$0xff]   ;;  %v1073_v3 = vld [vmem:[#allocation8 + $0x78] sm:$0xff]  }
  0x5b   :  { %v802_v4 = vld [vmem:[%s1416_s4] ss:$0 sm:$0xff]  ;;  %v803_v5 = vld [vmem:[%s1416_s4 + $0x1] ss:$0 sm:$0xff] }
  0x5c   :  { %906 = vmatpush3.bf16.msra.mxu0 %v1034_v9  ;;  %926 = vmatpush3.bf16.msra.mxu1 %v1035_v10 }
  0x5d   :  { %907 = vmatprep.subr.bf16.mxu0 %v1202_v0  ;;  %927 = vmatprep.subr.bf16.mxu1 %v1202_v0 }
  0x60   :  { %908 = vmatpush3.bf16.msra.mxu0 %v1036_v11  ;;  %928 = vmatpush3.bf16.msra.mxu1 %v1037_v12 }
  0x61   :  { %909 = vmatprep.subr.bf16.mxu0 %v1202_v0  ;;  %929 = vmatprep.subr.bf16.mxu1 %v1202_v0 }
  0x64   :  { %910 = vmatpush3.bf16.msra.mxu0 %v1038_v13  ;;  %930 = vmatpush3.bf16.msra.mxu1 %v1039_v14 }
  0x65   :  { %911 = vmatprep.subr.bf16.mxu0 %v1202_v0  ;;  %931 = vmatprep.subr.bf16.mxu1 %v1202_v0 }
  0x68   :  { %912 = vmatpush3.bf16.msra.mxu0 %v1040_v15  ;;  %932 = vmatpush3.bf16.msra.mxu1 %v1041_v16 }
  0x69   :  { %937 = vmatprep.subr.bf16.mxu0 %v1202_v0  ;;  %957 = vmatprep.subr.bf16.mxu1 %v1202_v0 }
  0x6b   :  { %914 = vmatmul.mubr.bf16.vlgmr.msra.gmra.mrb[0].mxu0 %v83_v17  ;;  %934 = vmatmul.mubr.bf16.vlgmr.msra.gmra.mrb[0].mxu1 %v84_v19  ;;  %v820_v19 = vld [vmem:[%s1418_s6] ss:$0 sm:$0xff] }
  0x6c   :  { %938 = vmatpush3.bf16.msra.mxu0 %v1042_v18  ;;  %958 = vmatpush3.bf16.msra.mxu1 %v1043_v20  ;;  %v821_v20 = vld [vmem:[%s1418_s6 + $0x1] ss:$0 sm:$0xff]  ;;  %s1166_s6 = scalar_lea.vmem %s771_s16, 128 }
  0x6d   :  { %939 = vmatprep.subr.bf16.mxu0 %v1202_v0  ;;  %959 = vmatprep.subr.bf16.mxu1 %v1202_v0  ;;  %p1167_p4 = scmp.ne.s32.totalorder %s771_s16, %s1166_s6  ;;  %p1172_p6 = scmp.lt.s32.totalorder %s1166_s6, %s1166_s6 }
  0x6e   :  { %953 = vmatprep.mubr.msk.bf16.mxu0 %vm1203_vm0, %v1202_v0  ;;  %973 = vmatprep.mubr.msk.bf16.mxu1 %vm1203_vm0, %v1202_v0 }
  0x6f   :  { %p1173_p7 = por %p1172_p6, %p1171_p5 }
  0x70   :  { %940 = vmatpush3.bf16.msra.mxu0 %v1044_v21  ;;  %960 = vmatpush3.bf16.msra.mxu1 %v1045_v22 }
  0x71   :  { %941 = vmatprep.subr.bf16.mxu0 %v1202_v0  ;;  %961 = vmatprep.subr.bf16.mxu1 %v1202_v0  ;;  %p1174_p8 = pnand %p1173_p7, %p1167_p4 }
  0x74   :  { %942 = vmatpush3.bf16.msra.mxu0 %v1046_v23  ;;  %962 = vmatpush3.bf16.msra.mxu1 %v1047_v24 }
  0x75   :  { %943 = vmatprep.subr.bf16.mxu0 %v1202_v0  ;;  %963 = vmatprep.subr.bf16.mxu1 %v1202_v0 }
  0x78   :  { %944 = vmatpush3.bf16.msra.mxu0 %v1048_v25  ;;  %964 = vmatpush3.bf16.msra.mxu1 %v1049_v26 }
  0x79   :  { %945 = vmatprep.subr.bf16.mxu0 %v1202_v0  ;;  %965 = vmatprep.subr.bf16.mxu1 %v1202_v0 }
  0x7c   :  { %946 = vmatpush3.bf16.msra.mxu0 %v1050_v27  ;;  %966 = vmatpush3.bf16.msra.mxu1 %v1051_v28 }
  0x7d   :  { %947 = vmatprep.subr.bf16.mxu0 %v1202_v0  ;;  %967 = vmatprep.subr.bf16.mxu1 %v1202_v0 }
  0x80   :  { %948 = vmatpush3.bf16.msra.mxu0 %v1052_v29  ;;  %968 = vmatpush3.bf16.msra.mxu1 %v1053_v30 }
  0x81   :  { %949 = vmatprep.subr.bf16.mxu0 %v1202_v0  ;;  %969 = vmatprep.subr.bf16.mxu1 %v1202_v0 }
  0x84   :  { %950 = vmatpush3.bf16.msra.mxu0 %v1054_v31  ;;  %970 = vmatpush3.bf16.msra.mxu1 %v1055_v32 }
  0x85   :  { %951 = vmatprep.subr.bf16.mxu0 %v1202_v0  ;;  %971 = vmatprep.subr.bf16.mxu1 %v1202_v0 }
  0x88   :  { %952 = vmatpush3.bf16.msra.mxu0 %v1056_v33  ;;  %972 = vmatpush3.bf16.msra.mxu1 %v1057_v34 }
  0x89   :  { %977 = vmatprep.subr.bf16.mxu0 %v1202_v0  ;;  %997 = vmatprep.subr.bf16.mxu1 %v1202_v0 }
 0x13e   :  { %v213_v37 = vpop.f32.mrb[0].mxu0  ;;  %v301_v39 = vpop.f32.mrb[0].mxu1 }
 0x13f   :  { %v214_v38 = vadd.f32 %v784_v35, %v213_v37  ;;  %v915_v40 = vpop.f32.mrb[1].mxu0  ;;  %v302_v41 = vadd.f32 %v785_v36, %v301_v39  ;;  %v935_v42 = vpop.f32.mrb[1].mxu1 }
 0x140   :  { %v216_v43 = vpop.f32.mrb[2].mxu0  ;;  %v304_v45 = vpop.f32.mrb[2].mxu1 }
 0x141   :  { %v307_v44 = vmax.f32 %v214_v38, 0.0  ;;  %v916_v46 = vpop.f32.mrb[3].mxu0  ;;  %v308_v47 = vmax.f32 %v302_v41, 0.0  ;;  %v936_v48 = vpop.f32.mrb[3].mxu1 }
 0x143   :  { %v309_v50 = vpack.c.bf16 %v307_v44, %v307_v44  ;;  %v310_v52 = vpack.c.bf16 %v308_v47, %v308_v47 }
 0x145   :  { %954 = vmatmul.mubr.bf16.vlgmr.msra.gmra.mrb[4].mxu0 %v309_v50  ;;  %974 = vmatmul.mubr.bf16.vlgmr.msra.gmra.mrb[4].mxu1 %v310_v52 }
 0x146   :  { %978 = vmatpush3.bf16.msra.mxu0 %v1058_v49  ;;  %998 = vmatpush3.bf16.msra.mxu1 %v1059_v51 }
 0x147   :  { %979 = vmatprep.subr.bf16.mxu0 %v1202_v0  ;;  %999 = vmatprep.subr.bf16.mxu1 %v1202_v0 }
 0x148   :  { %993 = vmatprep.mubr.msk.bf16.mxu0 %vm1203_vm0, %v1202_v0  ;;  %1013 = vmatprep.mubr.msk.bf16.mxu1 %vm1203_vm0, %v1202_v0 }
 0x14a   :  { %980 = vmatpush3.bf16.msra.mxu0 %v1060_v53  ;;  %1000 = vmatpush3.bf16.msra.mxu1 %v1061_v54 }
 0x14b   :  { %981 = vmatprep.subr.bf16.mxu0 %v1202_v0  ;;  %1001 = vmatprep.subr.bf16.mxu1 %v1202_v0 }
 0x14e   :  { %982 = vmatpush3.bf16.msra.mxu0 %v1062_v55  ;;  %1002 = vmatpush3.bf16.msra.mxu1 %v1063_v56 }
 0x14f   :  { %983 = vmatprep.subr.bf16.mxu0 %v1202_v0  ;;  %1003 = vmatprep.subr.bf16.mxu1 %v1202_v0 }
 0x152   :  { %984 = vmatpush3.bf16.msra.mxu0 %v1064_v57  ;;  %1004 = vmatpush3.bf16.msra.mxu1 %v1065_v58 }
 0x153   :  { %985 = vmatprep.subr.bf16.mxu0 %v1202_v0  ;;  %1005 = vmatprep.subr.bf16.mxu1 %v1202_v0 }
 0x156   :  { %986 = vmatpush3.bf16.msra.mxu0 %v1066_v59  ;;  %1006 = vmatpush3.bf16.msra.mxu1 %v1067_v60 }
 0x157   :  { %987 = vmatprep.subr.bf16.mxu0 %v1202_v0  ;;  %1007 = vmatprep.subr.bf16.mxu1 %v1202_v0 }
 0x15a   :  { %988 = vmatpush3.bf16.msra.mxu0 %v1068_v61  ;;  %1008 = vmatpush3.bf16.msra.mxu1 %v1069_v62 }
 0x15b   :  { %989 = vmatprep.subr.bf16.mxu0 %v1202_v0  ;;  %1009 = vmatprep.subr.bf16.mxu1 %v1202_v0 }
 0x15e   :  { %990 = vmatpush3.bf16.msra.mxu0 %v1070_v63  ;;  %1010 = vmatpush3.bf16.msra.mxu1 %v1071_v1 }
 0x15f   :  { %991 = vmatprep.subr.bf16.mxu0 %v1202_v0  ;;  %1011 = vmatprep.subr.bf16.mxu1 %v1202_v0 }
 0x162   :  { %992 = vmatpush3.bf16.msra.mxu0 %v1072_v2  ;;  %1012 = vmatpush3.bf16.msra.mxu1 %v1073_v3 }
 0x218   :  { %v439_v6 = vpop.f32.mrb[4].mxu0  ;;  %v527_v8 = vpop.f32.mrb[4].mxu1 }
 0x219   :  { %v440_v7 = vadd.f32 %v802_v4, %v439_v6  ;;  %v955_v9 = vpop.f32.mrb[5].mxu0  ;;  %v528_v10 = vadd.f32 %v803_v5, %v527_v8  ;;  %v975_v11 = vpop.f32.mrb[5].mxu1 }
 0x21a   :  { %v442_v12 = vpop.f32.mrb[6].mxu0  ;;  %v530_v13 = vpop.f32.mrb[6].mxu1 }
 0x21b   :  { %v533_v0 = vmax.f32 %v440_v7, 0.0  ;;  %v956_v14 = vpop.f32.mrb[7].mxu0  ;;  %v534_v15 = vmax.f32 %v528_v10, 0.0  ;;  %v976_v16 = vpop.f32.mrb[7].mxu1 }
 0x21d   :  { %v535_v17 = vpack.c.bf16 %v533_v0, %v533_v0  ;;  %v536_v18 = vpack.c.bf16 %v534_v15, %v534_v15 }
 0x21f   :  { %994 = vmatmul.mubr.bf16.vlgmr.msra.gmra.mrb[8].mxu0 %v535_v17  ;;  %1014 = vmatmul.mubr.bf16.vlgmr.msra.gmra.mrb[8].mxu1 %v536_v18 }
 0x2f2   :  { %v665_v21 = vpop.f32.mrb[8].mxu0  ;;  %v753_v23 = vpop.f32.mrb[8].mxu1 }
 0x2f3   :  { %v666_v22 = vadd.f32 %v820_v19, %v665_v21  ;;  %v995_v24 = vpop.f32.mrb[9].mxu0  ;;  %v754_v25 = vadd.f32 %v821_v20, %v753_v23  ;;  %v1015_v26 = vpop.f32.mrb[9].mxu1 }
 0x2f4   :  { %v668_v27 = vpop.f32.mrb[10].mxu0  ;;  %v756_v28 = vpop.f32.mrb[10].mxu1 }
 0x2f5   :  { %1074 = vtanh.f32 %v666_v22  ;;  %v996_v29 = vpop.f32.mrb[11].mxu0  ;;  %v1016_v30 = vpop.f32.mrb[11].mxu1 }
 0x2f6   :  { %1076 = vtanh.f32 %v754_v25 }
 0x2ff   :  { %v1075_v31 = vpop.eup %1074 }
 0x300   :  { %v1077_v32 = vpop.eup %1076 }
 0x301   :  { %v841_v33 = vpack.c.bf16 %v1077_v32, %v1075_v31 }
 0x303   :  { %842 = vst [vmem:[#allocation10] sm:$0xff] %v841_v33  }
 0x304   :  { %1177 = shalt.err (!%p1174_p8)
}
 0x305   :  { %s1178_s17 = scalar_lea.hbm %s1419_s7, 128 }
 0x306   :  { %p1179_p9 = scmp.ne.s32.totalorder %s1419_s7, %s1178_s17  ;;  %p1182_p10 = scmp.lt.u32.totalorder %s1178_s17, %s1419_s7 }
 0x308   :  { %p1184_p11 = pnand %p1182_p10, %p1179_p9 }
 0x30a   :  { %1187 = shalt.err (!%p1184_p11)
}
 0x30b   :  { %776 = dma.vmem_to_hbm [thread:$0]  %s771_s16, 128, %s1419_s7, [#allocation4], %s1198_s13, %s1198_s13, %s1199_s14  }
 0x30c   :  { %1194 = dma.done.wait [#allocation4], 128  }
 0x30d   :  { %1195 = vsyncadd [#allocation4], 4294967168 }
 0x30e   :  { %780 = vsyncpa [#allocation3], 1 }
 0x30f   :  { %781 = vsyncpa [#allocation6], 1 }
 0x310   :  { %782 = vsyncpa [#allocation9], 1 }
 0x311   :  { %783 = vsyncpa [#allocation4], 1 }

</bundles_post_ra>
